<compile_context>
chip_gen: v7x
topology: tpu7x:2x2x1
jax: 0.10.0
libtpu: 0.0.40
codegen_flags: <defaults>
</compile_context>

<pallas_src>
import functools

import numpy as np

import jax
import jax.numpy as jnp
from jax.experimental import pallas as pl
from jax.experimental.pallas import tpu as pltpu


_LANE = 128
VMEM_BUDGET_BYTES = 48 << 20      # conservative across v5e/v6e/v7x (v7x physical = 64 MiB/TC)
TARGET_X_TILE_BYTES = 8 << 20     # per-buffer x-tile target (multi-MiB tiles ~ HBM roofline)


def _round_up(v, m):
    return ((v + m - 1) // m) * m


# ----------------------------- in-kernel helpers -----------------------------

def _erf_poly(x):
    # Abramowitz & Stegun 7.1.26 polynomial erf, max abs err ~1.5e-7 (f32 level).
    a1, a2, a3, a4, a5 = (0.254829592, -0.284496736, 1.421413741,
                          -1.453152027, 1.061405429)
    p = 0.3275911
    s = jnp.where(x >= 0.0, 1.0, -1.0)
    ax = jnp.abs(x)
    t = 1.0 / (1.0 + p * ax)
    poly = ((((a5 * t + a4) * t + a3) * t + a2) * t + a1) * t
    return s * (1.0 - poly * jnp.exp(-ax * ax))


def _gelu_exact(x):
    # PyTorch nn.GELU() default (erf-based, approximate='none').
    return 0.5 * x * (1.0 + _erf_poly(x * 0.7071067811865476))


# --------------------------------- the kernel ---------------------------------

def router_kernel(x_ref, wf1_ref, bf1_ref, w2_ref, b2_ref,
                  logit_ref, idx_ref, *, top_k):
    TB = x_ref.shape[0]
    E = w2_ref.shape[1]
    K = top_k

    x = x_ref[...]                                               # [TB, C*D] bf16, lane dense

    # Fused (Conv1d + Linear1) -> GELU -> Linear2: bf16 MXU inputs, f32 accumulation.
    h = jnp.dot(x, wf1_ref[...], preferred_element_type=jnp.float32) + bf1_ref[...]
    h = _gelu_exact(h)
    logits = jnp.dot(h.astype(jnp.bfloat16), w2_ref[...],
                     preferred_element_type=jnp.float32) + b2_ref[...]

    # Unnormalized softmax: the denominator cancels in the final renormalization,
    # so skip the [TB, E] divide and extra XLU sum entirely.
    m = jnp.max(logits, axis=1, keepdims=True)
    e = jnp.exp(logits - m)                                      # [TB, E]

    # Top-k via unrolled iterative argmax (lowest-index tie break). Assumes K <= E.
    iota_e = jax.lax.broadcasted_iota(jnp.int32, (TB, E), 1)
    work = e
    vals, idxs = [], []
    for _ in range(K):
        vmax = jnp.max(work, axis=1, keepdims=True)              # [TB, 1]
        imax = jnp.min(jnp.where(work == vmax, iota_e, E), axis=1,
                       keepdims=True)                            # [TB, 1]
        vals.append(vmax)
        idxs.append(imax)
        work = jnp.where(iota_e == imax, -jnp.inf, work)

    total = vals[0]
    for v in vals[1:]:
        total = total + v
    inv_total = pl.reciprocal(total, approx=False)               # one divide, not K

    # Consolidated epilogue: one full-tile store per output ref (the K-column
    # concatenate is a cheap lane shuffle on the otherwise-idle XLU).
    logit_ref[...] = jnp.concatenate(vals, axis=1) * inv_total
    idx_ref[...] = jnp.concatenate(idxs, axis=1)


# --------------------------- parameter fusion (once) ---------------------------

def fuse_router_params(params, in_channel, in_dim):
    """Fold Conv1d(k=3, pad=1, out=1) + Linear1 into one [C*D, 4C] weight.

    Done once outside the kernel; in production cache the result. The fused
    matmul weights are cast to bf16 (biases stay f32).
    """
    C, D = in_channel, in_dim
    cw_t = params["conv_w_t"]            # [3, D]  (= torch conv weight[0].T)
    cb = params["conv_b"]                # [1]
    w1, b1 = params["w1"], params["b1"]  # [C, 4C], [1, 4C]

    # Banded conv matrix: W_band[c'*D + d, c] = cw_t[c' - c + 1, d] if |c'-c|<=1.
    src = jnp.arange(C)[:, None]         # c' (input channel position)
    dst = jnp.arange(C)[None, :]         # c  (output position)
    k = src - dst + 1                    # [C, C] tap index
    valid = (k >= 0) & (k <= 2)
    taps = cw_t[jnp.clip(k, 0, 2)]       # [C, C, D]
    taps = jnp.where(valid[:, :, None], taps, 0.0)
    w_band = jnp.transpose(taps, (0, 2, 1)).reshape(C * D, C)    # [(c', d), c]

    wf1 = (w_band @ w1).astype(jnp.bfloat16)                      # [C*D, 4C] bf16
    bf1 = b1 + cb[0] * jnp.sum(w1, axis=0, keepdims=True)         # [1, 4C]   f32
    return dict(wf1=wf1, bf1=bf1,
                w2=params["w2"].astype(jnp.bfloat16), b2=params["b2"])


# ------------------------------- tile selection --------------------------------

def _select_batch_tile(B, F, resident_bytes, x_elem_bytes=2, max_block_b=None):
    """Pick a batch tile: multi-MiB x tile, bounded by the VMEM budget."""
    row_bytes = _round_up(F, _LANE) * x_elem_bytes
    avail = VMEM_BUDGET_BYTES - resident_bytes - (2 << 20)        # slack: outputs/biases/scratch
    tb_cap = max(avail // (2 * row_bytes), 8)                     # x is double-buffered
    tb = int(max(min(TARGET_X_TILE_BYTES // row_bytes, tb_cap), 8))
    if max_block_b is not None:
        tb = min(tb, int(max_block_b))
    if B <= tb:
        return B, 1                                               # single tile == full array dims
    tb = max((tb // 16) * 16, 16)                                 # bf16 sublane-packing aligned
    return tb, -(-B // tb)


# --------------------------------- wrapper ------------------------------------

def router_forward(x, fused, top_k, max_block_b=None):
    """x: [B, in_channel, in_dim] f32 -> (router_logit [B,K] f32, top_k_idx [B,K] i32)."""
    B, C, D = x.shape
    F = C * D
    H = fused["wf1"].shape[1]
    E = fused["w2"].shape[1]
    if top_k > E:
        raise ValueError("top_k must be <= num_exper")

    # Lane-dense bf16 input; in production this cast fuses into the producer.
    x_flat = x.reshape(B, F).astype(jnp.bfloat16)

    # Resident weight/bias VMEM (worst case: default 2 buffers if Buffered(1) falls back).
    resident_bytes = 2 * (
        _round_up(F, 8) * _round_up(H, _LANE) * 2      # wf1 bf16
        + _round_up(H, 8) * _round_up(E, _LANE) * 2    # w2  bf16
        + 8 * _round_up(H, _LANE) * 4                  # bf1 f32
        + 8 * _round_up(E, _LANE) * 4)                 # b2  f32

    TB, num_tiles = _select_batch_tile(B, F, resident_bytes, 2, max_block_b)
    Bp = num_tiles * TB
    if Bp != B:
        x_flat = jnp.pad(x_flat, ((0, Bp - B), (0, 0)))

    # Explicit scoped-VMEM request (v5e default 16 MiB / v6e-v7x 32 MiB can be too small).
    x_tile_bytes = 2 * _round_up(TB, 8) * _round_up(F, _LANE) * 2
    out_tile_bytes = 2 * _round_up(TB, 8) * _LANE * (4 + 4)
    need = resident_bytes + x_tile_bytes + out_tile_bytes
    vmem_limit = int(min(max(need + (4 << 20), 32 << 20), VMEM_BUDGET_BYTES))

    kernel = functools.partial(router_kernel, top_k=top_k)

    def _call(single_buffer_weights):
        if single_buffer_weights:
            def const_spec(shape):
                # Constant index_map -> DMA'd once; single buffer halves weight VMEM.
                return pl.BlockSpec(shape, lambda i: (0, 0), pipeline_mode=pl.Buffered(1))
        else:
            def const_spec(shape):
                return pl.BlockSpec(shape, lambda i: (0, 0))

        return pl.pallas_call(
            kernel,
            out_shape=(jax.ShapeDtypeStruct((Bp, top_k), jnp.float32),
                       jax.ShapeDtypeStruct((Bp, top_k), jnp.int32)),
            grid=(num_tiles,),
            in_specs=[
                pl.BlockSpec((TB, F), lambda i: (i, 0)),   # x tile (pipelined/double-buffered)
                const_spec((F, H)),                        # fused conv+W1 (resident, bf16)
                const_spec((1, H)),                        # fused bias    (resident, f32)
                const_spec((H, E)),                        # W2            (resident, bf16)
                const_spec((1, E)),                        # b2            (resident, f32)
            ],
            out_specs=(pl.BlockSpec((TB, top_k), lambda i: (i, 0)),
                       pl.BlockSpec((TB, top_k), lambda i: (i, 0))),
            compiler_params=pltpu.CompilerParams(
                dimension_semantics=("parallel",),         # shard batch grid across TCs (v7x)
                vmem_limit_bytes=vmem_limit),
        )(x_flat, fused["wf1"], fused["bf1"], fused["w2"], fused["b2"])

    try:
        logit, idx = _call(single_buffer_weights=True)
    except Exception:
        # pipeline_mode / pl.Buffered not supported by this JAX: default double-buffer.
        logit, idx = _call(single_buffer_weights=False)

    if Bp != B:
        logit = logit[:B]
        idx = idx[:B]
    return logit, idx


def init_params(key, in_channel, in_dim, num_exper):
    k1, k2, k3, k4, k5, k6 = jax.random.split(key, 6)
    s = 0.1
    return dict(
        conv_w_t=s * jax.random.normal(k1, (3, in_dim), jnp.float32),
        conv_b=s * jax.random.normal(k2, (1,), jnp.float32),
        w1=s * jax.random.normal(k3, (in_channel, 4 * in_channel), jnp.float32),
        b1=s * jax.random.normal(k4, (1, 4 * in_channel), jnp.float32),
        w2=s * jax.random.normal(k5, (4 * in_channel, num_exper), jnp.float32),
        b2=s * jax.random.normal(k6, (1, num_exper), jnp.float32),
    )


# ------------------------------ references ------------------------------------

def router_ref(x, params, top_k):
    """Exact PyTorch semantics in f32 (un-fused, un-quantized)."""
    B, C, D = x.shape
    xp = jnp.pad(x, ((0, 0), (1, 1), (0, 0)))
    cw_t, cb = params["conv_w_t"], params["conv_b"]
    conv = cb[0]
    for k in range(3):
        conv = conv + jnp.einsum("bcd,d->bc", xp[:, k:k + C, :], cw_t[k])
    h = jax.nn.gelu(conv @ params["w1"] + params["b1"], approximate=False)
    logits = h @ params["w2"] + params["b2"]
    probs = jax.nn.softmax(logits, axis=1)
    vals, idxs = jax.lax.top_k(probs, top_k)
    vals = vals / jnp.sum(vals, axis=1, keepdims=True)
    return vals, idxs


def router_ref_fused(x, fused, top_k):
    """Mirrors the kernel's math (fused conv+linear, bf16 matmul inputs, f32 acc)."""
    B = x.shape[0]
    xf = x.reshape(B, -1).astype(jnp.bfloat16)
    h = jnp.dot(xf, fused["wf1"], preferred_element_type=jnp.float32) + fused["bf1"]
    h = jax.nn.gelu(h, approximate=False)
    logits = jnp.dot(h.astype(jnp.bfloat16), fused["w2"],
                     preferred_element_type=jnp.float32) + fused["b2"]
    probs = jax.nn.softmax(logits, axis=1)
    vals, idxs = jax.lax.top_k(probs, top_k)
    vals = vals / jnp.sum(vals, axis=1, keepdims=True)
    return vals, idxs


if __name__ == "__main__":
    B, C, D, E, K = 4, 8, 16, 8, 2   # batch, in_channel, in_dim, num_exper, top_k

    key = jax.random.PRNGKey(0)
    kx, kp, kx2 = jax.random.split(key, 3)
    x = jax.random.normal(kx, (B, C, D), jnp.float32)
    params = init_params(kp, C, D, E)
    fused = fuse_router_params(params, C, D)

    # Single-tile path.
    logit, idx = jax.block_until_ready(router_forward(x, fused, K))
    assert logit.shape == (B, K) and idx.shape == (B, K)
    fl, fi = router_ref_fused(x, fused, K)          # same bf16 math -> tight check, exact indices
    np.testing.assert_allclose(np.asarray(logit), np.asarray(fl), atol=2e-4, rtol=2e-4)
    assert np.array_equal(np.asarray(idx), np.asarray(fi))
    el, _ = router_ref(x, params, K)                # exact f32 PyTorch semantics -> bf16-level tol
    np.testing.assert_allclose(np.asarray(logit), np.asarray(el), atol=1e-2, rtol=1e-2)

    # Multi-tile, pipelined grid path (with batch padding + slice-back).
    B2 = 40
    x2 = jax.random.normal(kx2, (B2, C, D), jnp.float32)
    logit2, idx2 = jax.block_until_ready(router_forward(x2, fused, K, max_block_b=16))
    assert logit2.shape == (B2, K) and idx2.shape == (B2, K)
    fl2, fi2 = router_ref_fused(x2, fused, K)
    np.testing.assert_allclose(np.asarray(logit2), np.asarray(fl2), atol=2e-4, rtol=2e-4)
    assert np.array_equal(np.asarray(idx2), np.asarray(fi2))
    el2, _ = router_ref(x2, params, K)
    np.testing.assert_allclose(np.asarray(logit2), np.asarray(el2), atol=1e-2, rtol=1e-2)

    print("KERNEL_OK")
</pallas_src>

<mosaic_0001>
module attributes {stable_mosaic.version = 11 : i64} {
  func.func @router_kernel(%arg0: i32, %arg1: memref<4x128xbf16, #tpu.memory_space<vmem>>, %arg2: memref<128x32xbf16, #tpu.memory_space<vmem>>, %arg3: memref<1x32xf32, #tpu.memory_space<vmem>>, %arg4: memref<32x8xbf16, #tpu.memory_space<vmem>>, %arg5: memref<1x8xf32, #tpu.memory_space<vmem>>, %arg6: memref<4x2xf32, #tpu.memory_space<vmem>>, %arg7: memref<4x2xi32, #tpu.memory_space<vmem>>) attributes {dimension_semantics = [#tpu.dimension_semantics<parallel>], iteration_bounds = array<i64: 1>, scalar_prefetch = 0 : i64, scratch_operands = 0 : i64, tpu.core_type = #tpu.core_type<tc>, window_params = [{transform_indices = @transform_0, window_bounds = array<i64: 4, 128>}, {pipeline_mode = #tpu.pipeline_mode<synchronous>, transform_indices = @transform_1, window_bounds = array<i64: 128, 32>}, {pipeline_mode = #tpu.pipeline_mode<synchronous>, transform_indices = @transform_2, window_bounds = array<i64: 1, 32>}, {pipeline_mode = #tpu.pipeline_mode<synchronous>, transform_indices = @transform_3, window_bounds = array<i64: 32, 8>}, {pipeline_mode = #tpu.pipeline_mode<synchronous>, transform_indices = @transform_4, window_bounds = array<i64: 1, 8>}, {transform_indices = @transform_5, window_bounds = array<i64: 4, 2>}, {transform_indices = @transform_6, window_bounds = array<i64: 4, 2>}]} {
    %c0 = arith.constant 0 : index
    %c0_0 = arith.constant 0 : index
    %0 = vector.load %arg1[%c0, %c0_0] : memref<4x128xbf16, #tpu.memory_space<vmem>>, vector<4x128xbf16>
    %c0_1 = arith.constant 0 : index
    %c0_2 = arith.constant 0 : index
    %1 = vector.load %arg2[%c0_1, %c0_2] : memref<128x32xbf16, #tpu.memory_space<vmem>>, vector<128x32xbf16>
    %cst = arith.constant dense<0.000000e+00> : vector<4x32xf32>
    %2 = tpu.matmul %0, %1, %cst {dimension_numbers = #tpu.dot_dimension_numbers<[1], [0], [0], [1], [0, 0, 1, 1], [], []>} : vector<4x128xbf16>, vector<128x32xbf16>, vector<4x32xf32> -> vector<4x32xf32>
    %c0_3 = arith.constant 0 : index
    %c0_4 = arith.constant 0 : index
    %3 = vector.load %arg3[%c0_3, %c0_4] : memref<1x32xf32, #tpu.memory_space<vmem>>, vector<1x32xf32>
    %4 = vector.broadcast %3 : vector<1x32xf32> to vector<4x32xf32>
    %5 = arith.addf %2, %4 : vector<4x32xf32>
    %cst_5 = arith.constant 5.000000e-01 : f32
    %6 = vector.broadcast %cst_5 : f32 to vector<4x32xf32>
    %7 = arith.mulf %6, %5 : vector<4x32xf32>
    %cst_6 = arith.constant 0.707106769 : f32
    %8 = vector.broadcast %cst_6 : f32 to vector<4x32xf32>
    %9 = arith.mulf %5, %8 : vector<4x32xf32>
    %cst_7 = arith.constant 0.000000e+00 : f32
    %10 = vector.broadcast %cst_7 : f32 to vector<4x32xf32>
    %11 = arith.cmpf oge, %9, %10 : vector<4x32xf32>
    %cst_8 = arith.constant 1.000000e+00 : f32
    %cst_9 = arith.constant -1.000000e+00 : f32
    %12 = vector.broadcast %cst_8 : f32 to vector<4x32xf32>
    %13 = vector.broadcast %cst_9 : f32 to vector<4x32xf32>
    %14 = arith.select %11, %12, %13 : vector<4x32xi1>, vector<4x32xf32>
    %15 = math.absf %9 : vector<4x32xf32>
    %cst_10 = arith.constant 0.327591091 : f32
    %16 = vector.broadcast %cst_10 : f32 to vector<4x32xf32>
    %17 = arith.mulf %16, %15 : vector<4x32xf32>
    %cst_11 = arith.constant 1.000000e+00 : f32
    %18 = vector.broadcast %cst_11 : f32 to vector<4x32xf32>
    %19 = arith.addf %18, %17 : vector<4x32xf32>
    %cst_12 = arith.constant 1.000000e+00 : f32
    %20 = vector.broadcast %cst_12 : f32 to vector<4x32xf32>
    %21 = arith.divf %20, %19 : vector<4x32xf32>
    %cst_13 = arith.constant 1.06140542 : f32
    %22 = vector.broadcast %cst_13 : f32 to vector<4x32xf32>
    %23 = arith.mulf %22, %21 : vector<4x32xf32>
    %cst_14 = arith.constant -1.45315206 : f32
    %24 = vector.broadcast %cst_14 : f32 to vector<4x32xf32>
    %25 = arith.addf %23, %24 : vector<4x32xf32>
    %26 = arith.mulf %25, %21 : vector<4x32xf32>
    %cst_15 = arith.constant 1.42141378 : f32
    %27 = vector.broadcast %cst_15 : f32 to vector<4x32xf32>
    %28 = arith.addf %26, %27 : vector<4x32xf32>
    %29 = arith.mulf %28, %21 : vector<4x32xf32>
    %cst_16 = arith.constant -0.284496725 : f32
    %30 = vector.broadcast %cst_16 : f32 to vector<4x32xf32>
    %31 = arith.addf %29, %30 : vector<4x32xf32>
    %32 = arith.mulf %31, %21 : vector<4x32xf32>
    %cst_17 = arith.constant 0.254829586 : f32
    %33 = vector.broadcast %cst_17 : f32 to vector<4x32xf32>
    %34 = arith.addf %32, %33 : vector<4x32xf32>
    %35 = arith.mulf %34, %21 : vector<4x32xf32>
    %cst_18 = arith.constant 0.000000e+00 : f32
    %36 = vector.broadcast %cst_18 : f32 to vector<4x32xf32>
    %37 = arith.subf %36, %15 : vector<4x32xf32>
    %38 = arith.mulf %37, %15 : vector<4x32xf32>
    %39 = math.exp %38 : vector<4x32xf32>
    %40 = arith.mulf %35, %39 : vector<4x32xf32>
    %cst_19 = arith.constant 1.000000e+00 : f32
    %41 = vector.broadcast %cst_19 : f32 to vector<4x32xf32>
    %42 = arith.subf %41, %40 : vector<4x32xf32>
    %43 = arith.mulf %14, %42 : vector<4x32xf32>
    %cst_20 = arith.constant 1.000000e+00 : f32
    %44 = vector.broadcast %cst_20 : f32 to vector<4x32xf32>
    %45 = arith.addf %44, %43 : vector<4x32xf32>
    %46 = arith.mulf %7, %45 : vector<4x32xf32>
    %47 = arith.truncf %46 : vector<4x32xf32> to vector<4x32xbf16>
    %c0_21 = arith.constant 0 : index
    %c0_22 = arith.constant 0 : index
    %48 = vector.load %arg4[%c0_21, %c0_22] : memref<32x8xbf16, #tpu.memory_space<vmem>>, vector<32x8xbf16>
    %cst_23 = arith.constant dense<0.000000e+00> : vector<4x8xf32>
    %49 = tpu.matmul %47, %48, %cst_23 {dimension_numbers = #tpu.dot_dimension_numbers<[1], [0], [0], [1], [0, 0, 1, 1], [], []>} : vector<4x32xbf16>, vector<32x8xbf16>, vector<4x8xf32> -> vector<4x8xf32>
    %c0_24 = arith.constant 0 : index
    %c0_25 = arith.constant 0 : index
    %50 = vector.load %arg5[%c0_24, %c0_25] : memref<1x8xf32, #tpu.memory_space<vmem>>, vector<1x8xf32>
    %51 = vector.broadcast %50 : vector<1x8xf32> to vector<4x8xf32>
    %52 = arith.addf %49, %51 : vector<4x8xf32>
    %cst_26 = arith.constant dense<0xFF800000> : vector<4xf32>
    %53 = vector.multi_reduction <maximumf>, %52, %cst_26 [1] : vector<4x8xf32> to vector<4xf32>
    %54 = vector.shape_cast %53 : vector<4xf32> to vector<4x1xf32>
    %55 = vector.broadcast %54 : vector<4x1xf32> to vector<4x8xf32>
    %56 = arith.subf %52, %55 : vector<4x8xf32>
    %57 = math.exp %56 : vector<4x8xf32>
    %58 = tpu.iota {dimensions = array<i32: 1>} : vector<4x8xi32>
    %cst_27 = arith.constant dense<0xFF800000> : vector<4xf32>
    %59 = vector.multi_reduction <maximumf>, %57, %cst_27 [1] : vector<4x8xf32> to vector<4xf32>
    %60 = vector.shape_cast %59 : vector<4xf32> to vector<4x1xf32>
    %61 = vector.broadcast %60 : vector<4x1xf32> to vector<4x8xf32>
    %62 = arith.cmpf oeq, %57, %61 : vector<4x8xf32>
    %c8_i32 = arith.constant 8 : i32
    %63 = vector.broadcast %c8_i32 : i32 to vector<4x8xi32>
    %64 = arith.select %62, %58, %63 : vector<4x8xi1>, vector<4x8xi32>
    %cst_28 = arith.constant dense<2147483647> : vector<4xi32>
    %65 = vector.multi_reduction <minsi>, %64, %cst_28 [1] : vector<4x8xi32> to vector<4xi32>
    %66 = vector.shape_cast %65 : vector<4xi32> to vector<4x1xi32>
    %67 = vector.broadcast %66 : vector<4x1xi32> to vector<4x8xi32>
    %68 = arith.cmpi eq, %58, %67 : vector<4x8xi32>
    %cst_29 = arith.constant 0xFF800000 : f32
    %69 = vector.broadcast %cst_29 : f32 to vector<4x8xf32>
    %70 = arith.select %68, %69, %57 : vector<4x8xi1>, vector<4x8xf32>
    %cst_30 = arith.constant dense<0xFF800000> : vector<4xf32>
    %71 = vector.multi_reduction <maximumf>, %70, %cst_30 [1] : vector<4x8xf32> to vector<4xf32>
    %72 = vector.shape_cast %71 : vector<4xf32> to vector<4x1xf32>
    %73 = vector.broadcast %72 : vector<4x1xf32> to vector<4x8xf32>
    %74 = arith.cmpf oeq, %70, %73 : vector<4x8xf32>
    %c8_i32_31 = arith.constant 8 : i32
    %75 = vector.broadcast %c8_i32_31 : i32 to vector<4x8xi32>
    %76 = arith.select %74, %58, %75 : vector<4x8xi1>, vector<4x8xi32>
    %cst_32 = arith.constant dense<2147483647> : vector<4xi32>
    %77 = vector.multi_reduction <minsi>, %76, %cst_32 [1] : vector<4x8xi32> to vector<4xi32>
    %78 = vector.shape_cast %77 : vector<4xi32> to vector<4x1xi32>
    %79 = arith.addf %60, %72 : vector<4x1xf32>
    %80 = tpu.reciprocal %79 : vector<4x1xf32> -> vector<4x1xf32>
    %81 = tpu.concatenate %60, %72 in 1 : vector<4x1xf32>, vector<4x1xf32> -> vector<4x2xf32>
    %82 = vector.broadcast %80 : vector<4x1xf32> to vector<4x2xf32>
    %83 = arith.mulf %81, %82 : vector<4x2xf32>
    %c0_33 = arith.constant 0 : index
    %c0_34 = arith.constant 0 : index
    %84 = vector.load %arg6[%c0_33, %c0_34] : memref<4x2xf32, #tpu.memory_space<vmem>>, vector<4x2xf32>
    tpu.vector_store %arg6[%c0_33, %c0_34], %83 {strides = array<i32>} : memref<4x2xf32, #tpu.memory_space<vmem>>, vector<4x2xf32>,
    %85 = tpu.concatenate %66, %78 in 1 : vector<4x1xi32>, vector<4x1xi32> -> vector<4x2xi32>
    %c0_35 = arith.constant 0 : index
    %c0_36 = arith.constant 0 : index
    %86 = vector.load %arg7[%c0_35, %c0_36] : memref<4x2xi32, #tpu.memory_space<vmem>>, vector<4x2xi32>
    tpu.vector_store %arg7[%c0_35, %c0_36], %85 {strides = array<i32>} : memref<4x2xi32, #tpu.memory_space<vmem>>, vector<4x2xi32>,
    return
  }
  func.func @transform_0(%arg0: i32) -> (i32, i32) {
    %c0_i32 = arith.constant 0 : i32
    %c0_i32_0 = arith.constant 0 : i32
    return %arg0, %c0_i32 : i32, i32
  }
  func.func @transform_1(%arg0: i32) -> (i32, i32) {
    %c0_i32 = arith.constant 0 : i32
    %c0_i32_0 = arith.constant 0 : i32
    %c0_i32_1 = arith.constant 0 : i32
    return %c0_i32, %c0_i32_0 : i32, i32
  }
  func.func @transform_2(%arg0: i32) -> (i32, i32) {
    %c0_i32 = arith.constant 0 : i32
    %c0_i32_0 = arith.constant 0 : i32
    %c0_i32_1 = arith.constant 0 : i32
    return %c0_i32, %c0_i32_0 : i32, i32
  }
  func.func @transform_3(%arg0: i32) -> (i32, i32) {
    %c0_i32 = arith.constant 0 : i32
    %c0_i32_0 = arith.constant 0 : i32
    %c0_i32_1 = arith.constant 0 : i32
    return %c0_i32, %c0_i32_0 : i32, i32
  }
  func.func @transform_4(%arg0: i32) -> (i32, i32) {
    %c0_i32 = arith.constant 0 : i32
    %c0_i32_0 = arith.constant 0 : i32
    %c0_i32_1 = arith.constant 0 : i32
    return %c0_i32, %c0_i32_0 : i32, i32
  }
  func.func @transform_5(%arg0: i32) -> (i32, i32) {
    %c0_i32 = arith.constant 0 : i32
    %c0_i32_0 = arith.constant 0 : i32
    return %arg0, %c0_i32 : i32, i32
  }
  func.func @transform_6(%arg0: i32) -> (i32, i32) {
    %c0_i32 = arith.constant 0 : i32
    %c0_i32_0 = arith.constant 0 : i32
    return %arg0, %c0_i32 : i32, i32
  }
}

module attributes {stable_mosaic.version = 11 : i64} {
  func.func @router_kernel(%arg0: i32, %arg1: memref<4x128xbf16, #tpu.memory_space<vmem>>, %arg2: memref<128x32xbf16, #tpu.memory_space<vmem>>, %arg3: memref<1x32xf32, #tpu.memory_space<vmem>>, %arg4: memref<32x8xbf16, #tpu.memory_space<vmem>>, %arg5: memref<1x8xf32, #tpu.memory_space<vmem>>, %arg6: memref<4x2xf32, #tpu.memory_space<vmem>>, %arg7: memref<4x2xi32, #tpu.memory_space<vmem>>) attributes {dimension_semantics = [#tpu.dimension_semantics<parallel>], iteration_bounds = array<i64: 1>, scalar_prefetch = 0 : i64, scratch_operands = 0 : i64, tpu.core_type = #tpu.core_type<tc>, window_params = [{transform_indices = @transform_0, window_bounds = array<i64: 4, 128>}, {pipeline_mode = #tpu.pipeline_mode<synchronous>, transform_indices = @transform_1, window_bounds = array<i64: 128, 32>}, {pipeline_mode = #tpu.pipeline_mode<synchronous>, transform_indices = @transform_2, window_bounds = array<i64: 1, 32>}, {pipeline_mode = #tpu.pipeline_mode<synchronous>, transform_indices = @transform_3, window_bounds = array<i64: 32, 8>}, {pipeline_mode = #tpu.pipeline_mode<synchronous>, transform_indices = @transform_4, window_bounds = array<i64: 1, 8>}, {transform_indices = @transform_5, window_bounds = array<i64: 4, 2>}, {transform_indices = @transform_6, window_bounds = array<i64: 4, 2>}]} {
    %c0 = arith.constant 0 : index
    %c0_0 = arith.constant 0 : index
    %0 = vector.load %arg1[%c0, %c0_0] : memref<4x128xbf16, #tpu.memory_space<vmem>>, vector<4x128xbf16>
    %c0_1 = arith.constant 0 : index
    %c0_2 = arith.constant 0 : index
    %1 = vector.load %arg2[%c0_1, %c0_2] : memref<128x32xbf16, #tpu.memory_space<vmem>>, vector<128x32xbf16>
    %cst = arith.constant dense<0.000000e+00> : vector<4x32xf32>
    %2 = tpu.matmul %0, %1, %cst {dimension_numbers = #tpu.dot_dimension_numbers<[1], [0], [0], [1], [0, 0, 1, 1], [], []>} : vector<4x128xbf16>, vector<128x32xbf16>, vector<4x32xf32> -> vector<4x32xf32>
    %c0_3 = arith.constant 0 : index
    %c0_4 = arith.constant 0 : index
    %3 = vector.load %arg3[%c0_3, %c0_4] : memref<1x32xf32, #tpu.memory_space<vmem>>, vector<1x32xf32>
    %4 = vector.broadcast %3 : vector<1x32xf32> to vector<4x32xf32>
    %5 = arith.addf %2, %4 : vector<4x32xf32>
    %cst_5 = arith.constant 5.000000e-01 : f32
    %6 = vector.broadcast %cst_5 : f32 to vector<4x32xf32>
    %7 = arith.mulf %6, %5 : vector<4x32xf32>
    %cst_6 = arith.constant 0.707106769 : f32
    %8 = vector.broadcast %cst_6 : f32 to vector<4x32xf32>
    %9 = arith.mulf %5, %8 : vector<4x32xf32>
    %cst_7 = arith.constant 0.000000e+00 : f32
    %10 = vector.broadcast %cst_7 : f32 to vector<4x32xf32>
    %11 = arith.cmpf oge, %9, %10 : vector<4x32xf32>
    %cst_8 = arith.constant 1.000000e+00 : f32
    %cst_9 = arith.constant -1.000000e+00 : f32
    %12 = vector.broadcast %cst_8 : f32 to vector<4x32xf32>
    %13 = vector.broadcast %cst_9 : f32 to vector<4x32xf32>
    %14 = arith.select %11, %12, %13 : vector<4x32xi1>, vector<4x32xf32>
    %15 = math.absf %9 : vector<4x32xf32>
    %cst_10 = arith.constant 0.327591091 : f32
    %16 = vector.broadcast %cst_10 : f32 to vector<4x32xf32>
    %17 = arith.mulf %16, %15 : vector<4x32xf32>
    %cst_11 = arith.constant 1.000000e+00 : f32
    %18 = vector.broadcast %cst_11 : f32 to vector<4x32xf32>
    %19 = arith.addf %18, %17 : vector<4x32xf32>
    %cst_12 = arith.constant 1.000000e+00 : f32
    %20 = vector.broadcast %cst_12 : f32 to vector<4x32xf32>
    %21 = arith.divf %20, %19 : vector<4x32xf32>
    %cst_13 = arith.constant 1.06140542 : f32
    %22 = vector.broadcast %cst_13 : f32 to vector<4x32xf32>
    %23 = arith.mulf %22, %21 : vector<4x32xf32>
    %cst_14 = arith.constant -1.45315206 : f32
    %24 = vector.broadcast %cst_14 : f32 to vector<4x32xf32>
    %25 = arith.addf %23, %24 : vector<4x32xf32>
    %26 = arith.mulf %25, %21 : vector<4x32xf32>
    %cst_15 = arith.constant 1.42141378 : f32
    %27 = vector.broadcast %cst_15 : f32 to vector<4x32xf32>
    %28 = arith.addf %26, %27 : vector<4x32xf32>
    %29 = arith.mulf %28, %21 : vector<4x32xf32>
    %cst_16 = arith.constant -0.284496725 : f32
    %30 = vector.broadcast %cst_16 : f32 to vector<4x32xf32>
    %31 = arith.addf %29, %30 : vector<4x32xf32>
    %32 = arith.mulf %31, %21 : vector<4x32xf32>
    %cst_17 = arith.constant 0.254829586 : f32
    %33 = vector.broadcast %cst_17 : f32 to vector<4x32xf32>
    %34 = arith.addf %32, %33 : vector<4x32xf32>
    %35 = arith.mulf %34, %21 : vector<4x32xf32>
    %cst_18 = arith.constant 0.000000e+00 : f32
    %36 = vector.broadcast %cst_18 : f32 to vector<4x32xf32>
    %37 = arith.subf %36, %15 : vector<4x32xf32>
    %38 = arith.mulf %37, %15 : vector<4x32xf32>
    %39 = math.exp %38 : vector<4x32xf32>
    %40 = arith.mulf %35, %39 : vector<4x32xf32>
    %cst_19 = arith.constant 1.000000e+00 : f32
    %41 = vector.broadcast %cst_19 : f32 to vector<4x32xf32>
    %42 = arith.subf %41, %40 : vector<4x32xf32>
    %43 = arith.mulf %14, %42 : vector<4x32xf32>
    %cst_20 = arith.constant 1.000000e+00 : f32
    %44 = vector.broadcast %cst_20 : f32 to vector<4x32xf32>
    %45 = arith.addf %44, %43 : vector<4x32xf32>
    %46 = arith.mulf %7, %45 : vector<4x32xf32>
    %47 = arith.truncf %46 : vector<4x32xf32> to vector<4x32xbf16>
    %c0_21 = arith.constant 0 : index
    %c0_22 = arith.constant 0 : index
    %48 = vector.load %arg4[%c0_21, %c0_22] : memref<32x8xbf16, #tpu.memory_space<vmem>>, vector<32x8xbf16>
    %cst_23 = arith.constant dense<0.000000e+00> : vector<4x8xf32>
    %49 = tpu.matmul %47, %48, %cst_23 {dimension_numbers = #tpu.dot_dimension_numbers<[1], [0], [0], [1], [0, 0, 1, 1], [], []>} : vector<4x32xbf16>, vector<32x8xbf16>, vector<4x8xf32> -> vector<4x8xf32>
    %c0_24 = arith.constant 0 : index
    %c0_25 = arith.constant 0 : index
    %50 = vector.load %arg5[%c0_24, %c0_25] : memref<1x8xf32, #tpu.memory_space<vmem>>, vector<1x8xf32>
    %51 = vector.broadcast %50 : vector<1x8xf32> to vector<4x8xf32>
    %52 = arith.addf %49, %51 : vector<4x8xf32>
    %cst_26 = arith.constant dense<0xFF800000> : vector<4xf32>
    %53 = vector.multi_reduction <maximumf>, %52, %cst_26 [1] : vector<4x8xf32> to vector<4xf32>
    %54 = vector.shape_cast %53 : vector<4xf32> to vector<4x1xf32>
    %55 = vector.broadcast %54 : vector<4x1xf32> to vector<4x8xf32>
    %56 = arith.subf %52, %55 : vector<4x8xf32>
    %57 = math.exp %56 : vector<4x8xf32>
    %58 = tpu.iota {dimensions = array<i32: 1>} : vector<4x8xi32>
    %cst_27 = arith.constant dense<0xFF800000> : vector<4xf32>
    %59 = vector.multi_reduction <maximumf>, %57, %cst_27 [1] : vector<4x8xf32> to vector<4xf32>
    %60 = vector.shape_cast %59 : vector<4xf32> to vector<4x1xf32>
    %61 = vector.broadcast %60 : vector<4x1xf32> to vector<4x8xf32>
    %62 = arith.cmpf oeq, %57, %61 : vector<4x8xf32>
    %c8_i32 = arith.constant 8 : i32
    %63 = vector.broadcast %c8_i32 : i32 to vector<4x8xi32>
    %64 = arith.select %62, %58, %63 : vector<4x8xi1>, vector<4x8xi32>
    %cst_28 = arith.constant dense<2147483647> : vector<4xi32>
    %65 = vector.multi_reduction <minsi>, %64, %cst_28 [1] : vector<4x8xi32> to vector<4xi32>
    %66 = vector.shape_cast %65 : vector<4xi32> to vector<4x1xi32>
    %67 = vector.broadcast %66 : vector<4x1xi32> to vector<4x8xi32>
    %68 = arith.cmpi eq, %58, %67 : vector<4x8xi32>
    %cst_29 = arith.constant 0xFF800000 : f32
    %69 = vector.broadcast %cst_29 : f32 to vector<4x8xf32>
    %70 = arith.select %68, %69, %57 : vector<4x8xi1>, vector<4x8xf32>
    %cst_30 = arith.constant dense<0xFF800000> : vector<4xf32>
    %71 = vector.multi_reduction <maximumf>, %70, %cst_30 [1] : vector<4x8xf32> to vector<4xf32>
    %72 = vector.shape_cast %71 : vector<4xf32> to vector<4x1xf32>
    %73 = vector.broadcast %72 : vector<4x1xf32> to vector<4x8xf32>
    %74 = arith.cmpf oeq, %70, %73 : vector<4x8xf32>
    %c8_i32_31 = arith.constant 8 : i32
    %75 = vector.broadcast %c8_i32_31 : i32 to vector<4x8xi32>
    %76 = arith.select %74, %58, %75 : vector<4x8xi1>, vector<4x8xi32>
    %cst_32 = arith.constant dense<2147483647> : vector<4xi32>
    %77 = vector.multi_reduction <minsi>, %76, %cst_32 [1] : vector<4x8xi32> to vector<4xi32>
    %78 = vector.shape_cast %77 : vector<4xi32> to vector<4x1xi32>
    %79 = arith.addf %60, %72 : vector<4x1xf32>
    %80 = tpu.reciprocal %79 : vector<4x1xf32> -> vector<4x1xf32>
    %81 = tpu.concatenate %60, %72 in 1 : vector<4x1xf32>, vector<4x1xf32> -> vector<4x2xf32>
    %82 = vector.broadcast %80 : vector<4x1xf32> to vector<4x2xf32>
    %83 = arith.mulf %81, %82 : vector<4x2xf32>
    %c0_33 = arith.constant 0 : index
    %c0_34 = arith.constant 0 : index
    %84 = vector.load %arg6[%c0_33, %c0_34] : memref<4x2xf32, #tpu.memory_space<vmem>>, vector<4x2xf32>
    tpu.vector_store %arg6[%c0_33, %c0_34], %83 {strides = array<i32>} : memref<4x2xf32, #tpu.memory_space<vmem>>, vector<4x2xf32>,
    %85 = tpu.concatenate %66, %78 in 1 : vector<4x1xi32>, vector<4x1xi32> -> vector<4x2xi32>
    %c0_35 = arith.constant 0 : index
    %c0_36 = arith.constant 0 : index
    %86 = vector.load %arg7[%c0_35, %c0_36] : memref<4x2xi32, #tpu.memory_space<vmem>>, vector<4x2xi32>
    tpu.vector_store %arg7[%c0_35, %c0_36], %85 {strides = array<i32>} : memref<4x2xi32, #tpu.memory_space<vmem>>, vector<4x2xi32>,
    return
  }
  func.func @transform_0(%arg0: i32) -> (i32, i32) {
    %c0_i32 = arith.constant 0 : i32
    %c0_i32_0 = arith.constant 0 : i32
    return %arg0, %c0_i32 : i32, i32
  }
  func.func @transform_1(%arg0: i32) -> (i32, i32) {
    %c0_i32 = arith.constant 0 : i32
    %c0_i32_0 = arith.constant 0 : i32
    %c0_i32_1 = arith.constant 0 : i32
    return %c0_i32, %c0_i32_0 : i32, i32
  }
  func.func @transform_2(%arg0: i32) -> (i32, i32) {
    %c0_i32 = arith.constant 0 : i32
    %c0_i32_0 = arith.constant 0 : i32
    %c0_i32_1 = arith.constant 0 : i32
    return %c0_i32, %c0_i32_0 : i32, i32
  }
  func.func @transform_3(%arg0: i32) -> (i32, i32) {
    %c0_i32 = arith.constant 0 : i32
    %c0_i32_0 = arith.constant 0 : i32
    %c0_i32_1 = arith.constant 0 : i32
    return %c0_i32, %c0_i32_0 : i32, i32
  }
  func.func @transform_4(%arg0: i32) -> (i32, i32) {
    %c0_i32 = arith.constant 0 : i32
    %c0_i32_0 = arith.constant 0 : i32
    %c0_i32_1 = arith.constant 0 : i32
    return %c0_i32, %c0_i32_0 : i32, i32
  }
  func.func @transform_5(%arg0: i32) -> (i32, i32) {
    %c0_i32 = arith.constant 0 : i32
    %c0_i32_0 = arith.constant 0 : i32
    return %arg0, %c0_i32 : i32, i32
  }
  func.func @transform_6(%arg0: i32) -> (i32, i32) {
    %c0_i32 = arith.constant 0 : i32
    %c0_i32_0 = arith.constant 0 : i32
    return %arg0, %c0_i32 : i32, i32
  }
}

</mosaic_0001>

<bundles_post_ra>
// kernel: tpu_custom_call.1
= control target key start
LH: loop header
LB: loop body
LE: loop exit
PB: predicated region body
PF: predicated region fallthrough
CT: control target
= control target key end

     0   :  { %v372_v0 = vmov 0.0   ;;  %vm373_vm0 = vmmov 0   ;;  %v374_v38 = vmov -1.0   ;;  %vm186_vm2 = vcmask 261120   ;;  %s464_s1 = inlined_call_operand.vmem [shape: bf16[128,32], index: 1, kind: input, shape index: {}]   ;;  %s465_s0 = inlined_call_operand.vmem [shape: bf16[4,128], index: 0, kind: input, shape index: {}]   ;;  %s466_s3 = inlined_call_operand.vmem [shape: bf16[32,8], index: 3, kind: input, shape index: {}]   ;;  %s467_s2 = inlined_call_operand.vmem [shape: f32[1,32], index: 2, kind: input, shape index: {}]   ;;  %s468_s4 = inlined_call_operand.vmem [shape: f32[1,8], index: 4, kind: input, shape index: {}]   ;;  %s469_s5 = inlined_call_operand.vmem [shape: f32[4,2], index: 5, kind: output, shape index: {0}]   ;;  %s470_s6 = inlined_call_operand.vmem [shape: s32[4,2], index: 6, kind: output, shape index: {1}]  }
   0x1   :  { %323 = vmatprep.subr.bf16.mxu0 %v372_v0  ;;  %v354_v1 = vld [vmem:[%s464_s1] sm:$0xff]   ;;  %339 = vmatprep.mubr.msk.bf16.mxu0 %vm373_vm0, %v372_v0  ;;  %v355_v2 = vld [vmem:[%s464_s1 + $0x8] sm:$0xff]   ;;  %v356_v3 = vld [vmem:[%s464_s1 + $0x10] sm:$0xff]   ;;  %vm230_vm3 = vcmask 60416   ;;  %v237_v57 = vlaneseq  ;;  %vm283_vm8 = vcmask 7168   ;;  %vm286_vm9 = vcmask 11264  }
   0x2   :  { %343 = vmatprep.subr.bf16.mxu1 %v372_v0  ;;  %347 = vmatprep.mubr.msk.bf16.mxu1 %vm373_vm0, %v372_v0  ;;  %v357_v4 = vld [vmem:[%s464_s1 + $0x18] sm:$0xff]   ;;  %v358_v5 = vld [vmem:[%s464_s1 + $0x20] sm:$0xff]   ;;  %v359_v6 = vld [vmem:[%s464_s1 + $0x28] sm:$0xff]  }
   0x3   :  { %324 = vmatpush3.bf16.msra.mxu0 %v354_v1  ;;  %v360_v7 = vld [vmem:[%s464_s1 + $0x30] sm:$0xff]   ;;  %v361_v8 = vld [vmem:[%s464_s1 + $0x38] sm:$0xff]   ;;  %v23_v9 = vld [vmem:[%s465_s0] sm:$0x3]  ;;  %v238_v58 = vand.u32 127, %v237_v57 }
   0x4   :  { %325 = vmatprep.subr.bf16.mxu0 %v372_v0  ;;  %v362_v10 = vld [vmem:[%s466_s3] sm:$0xff]   ;;  %v363_v11 = vld [vmem:[%s466_s3 + $0x8] sm:$0xff]  }
   0x5   :  { %344 = vmatpush3.bf16.msra.mxu1 %v362_v10  ;;  %v298_v12 = vld [vmem:[%s467_s2] ss:$0 sm:$0xff] }
   0x6   :  { %345 = vmatprep.subr.bf16.mxu1 %v372_v0  ;;  %v307_v45 = vld [vmem:[%s468_s4] ss:$0 sm:$0xff] }
   0x7   :  { %326 = vmatpush3.bf16.msra.mxu0 %v355_v2 }
   0x8   :  { %327 = vmatprep.subr.bf16.mxu0 %v372_v0 }
   0x9   :  { %346 = vmatpush3.bf16.msra.mxu1 %v363_v11 }
   0xb   :  { %328 = vmatpush3.bf16.msra.mxu0 %v356_v3 }
   0xc   :  { %329 = vmatprep.subr.bf16.mxu0 %v372_v0 }
   0xf   :  { %330 = vmatpush3.bf16.msra.mxu0 %v357_v4 }
  0x10   :  { %331 = vmatprep.subr.bf16.mxu0 %v372_v0 }
  0x13   :  { %332 = vmatpush3.bf16.msra.mxu0 %v358_v5 }
  0x14   :  { %333 = vmatprep.subr.bf16.mxu0 %v372_v0 }
  0x17   :  { %334 = vmatpush3.bf16.msra.mxu0 %v359_v6 }
  0x18   :  { %335 = vmatprep.subr.bf16.mxu0 %v372_v0 }
  0x1b   :  { %336 = vmatpush3.bf16.msra.mxu0 %v360_v7 }
  0x1c   :  { %337 = vmatprep.subr.bf16.mxu0 %v372_v0 }
  0x1f   :  { %338 = vmatpush3.bf16.msra.mxu0 %v361_v8 }
  0x22   :  { %340 = vmatmul.mubr.bf16.vlgmr.msra.gmra.mrb[0].mxu0 %v23_v9 }
  0xf5   :  { %v129_v13 = vpop.f32.mrb[0].mxu0 }
  0xf6   :  { %v130_v14 = vadd.f32 %v298_v12, %v129_v13  ;;  %v341_v15 = vpop.f32.mrb[1].mxu0 }
  0xf7   :  { %v132_v16 = vpop.f32.mrb[2].mxu0 }
  0xf8   :  { %v136_v17 = vmul.f32 0.70710677, %v130_v14  ;;  %v342_v18 = vpop.f32.mrb[3].mxu0  ;;  %v135_v41 = vmul.f32 0.5, %v130_v14 }
  0xfa   :  { %v139_v19 = vand.u32 2147483647, %v136_v17  ;;  %vm137_vm1 = vcmp.ge.f32.partialorder %v136_v17, 0.0 }
  0xfb   :  { %v138_v39 = vsel %vm137_vm1, 1.0, %v374_v38 }
  0xfc   :  { %v140_v20 = vmul.f32 0.3275911, %v139_v19  ;;  %v153_v22 = vsub.f32 0.0, %v139_v19 }
  0xfe   :  { %v141_v21 = vadd.f32 1.0, %v140_v20  ;;  %v154_v24 = vmul.f32 %v153_v22, %v139_v19 }
 0x100   :  { %364 = vrcp.f32 %v141_v21  ;;  %v155_v27 = vmul.f32 1.442695, %v154_v24 }
 0x102   :  { %366 = vpow2.f32 %v155_v27 }
 0x10a   :  { %v365_v23 = vpop.eup %364 }
 0x10b   :  { %v144_v25 = vmul.f32 1.0614054, %v365_v23 }
 0x10c   :  { %v367_v35 = vpop.eup %366 }
 0x10d   :  { %v145_v26 = vadd.f32 -1.4531521, %v144_v25 }
 0x10f   :  { %v146_v28 = vmul.f32 %v365_v23, %v145_v26 }
 0x111   :  { %v147_v29 = vadd.f32 1.4214138, %v146_v28 }
 0x113   :  { %v148_v30 = vmul.f32 %v365_v23, %v147_v29 }
 0x115   :  { %v149_v31 = vadd.f32 -0.28449672, %v148_v30 }
 0x117   :  { %v150_v32 = vmul.f32 %v365_v23, %v149_v31 }
 0x119   :  { %v151_v33 = vadd.f32 0.2548296, %v150_v32 }
 0x11b   :  { %v152_v34 = vmul.f32 %v365_v23, %v151_v33 }
 0x11d   :  { %v157_v36 = vmul.f32 %v367_v35, %v152_v34 }
 0x11f   :  { %v158_v37 = vsub.f32 1.0, %v157_v36 }
 0x121   :  { %v159_v40 = vmul.f32 %v158_v37, %v138_v39 }
 0x123   :  { %v160_v42 = vadd.f32 1.0, %v159_v40 }
 0x125   :  { %v161_v43 = vmul.f32 %v160_v42, %v135_v41 }
 0x127   :  { %v162_v44 = vpack.c.bf16 %v161_v43, %v161_v43 }
 0x129   :  { %348 = vmatmul.mubr.msk.bf16.vlgmr.msra.gmra.mrb[0].mxu1 %vm186_vm2, %v162_v44 }
 0x1fc   :  { %v224_v46 = vpop.f32.mrb[0].mxu1 }
 0x1fd   :  { %v225_v47 = vadd.f32 %v307_v45, %v224_v46  ;;  %v349_v48 = vpop.f32.mrb[1].mxu1 }
 0x1fe   :  { %v227_v49 = vpop.f32.mrb[2].mxu1 }
 0x1ff   :  { %v350_v50 = vpop.f32.mrb[3].mxu1  ;;  %v231_v51 = vsel %vm230_vm3, %v225_v47, -inf }
 0x200   :  { %232 = vmax.xlane.f32.xlu0 %v231_v51 }
 0x28d   :  { %v233_v52 = vpop.xlane.xlu0 %232 }
 0x28e   :  { %v234_v53 = vsub.f32 %v225_v47, %v233_v52 }
 0x290   :  { %v235_v54 = vmul.f32 1.442695, %v234_v53 }
 0x292   :  { %368 = vpow2.f32 %v235_v54 }
 0x29c   :  { %v369_v55 = vpop.eup %368 }
 0x29d   :  { %v239_v56 = vsel %vm230_vm3, %v369_v55, -inf }
 0x29e   :  { %240 = vmax.xlane.f32.xlu0 %v239_v56 }
 0x32b   :  { %v241_v59 = vpop.xlane.xlu0 %240 }
 0x32c   :  { %vm242_vm4 = vcmp.eq.f32.partialorder %v369_v55, %v241_v59 }
 0x32d   :  { %v243_v60 = vsel %vm242_vm4, %v238_v58, 8 }
 0x32e   :  { %v244_v61 = vsel %vm230_vm3, %v243_v60, 2147483647 }
 0x32f   :  { %v246_v62 = vshra.s32 %v244_v61, 16  ;;  %v245_v0 = vand.u32 65535, %v244_v61 }
 0x331   :  { %v248_v63 = vcvt.s32.f32 %v246_v62  ;;  %v247_v2 = vcvt.s32.f32 %v245_v0 }
 0x333   :  { %249 = vmin.xlane.f32.xlu1 %v248_v63 }
 0x3c0   :  { %v250_v1 = vpop.xlane.xlu1 %249 }
 0x3c1   :  { %vm251_vm5 = vcmp.eq.f32.partialorder %v248_v63, %v250_v1  ;;  %v256_v4 = vcvt.f32.s32 %v250_v1 }
 0x3c2   :  { %v252_v3 = vsel %vm251_vm5, %v247_v2, inf }
 0x3c3   :  { %253 = vmin.xlane.f32.xlu1 %v252_v3  ;;  %v257_v6 = vshll.u32 %v256_v4, 16 }
 0x450   :  { %v254_v5 = vpop.xlane.xlu1 %253 }
 0x451   :  { %v255_v7 = vcvt.f32.s32 %v254_v5 }
 0x453   :  { %v258_v8 = vadd.s32 %v257_v6, %v255_v7 }
 0x455   :  { %vm259_vm6 = vcmp.eq.s32.totalorder %v238_v58, %v258_v8 }
 0x456   :  { %v260_v9 = vsel %vm259_vm6, -inf, %v369_v55 }
 0x457   :  { %v261_v10 = vsel %vm230_vm3, %v260_v9, -inf }
 0x458   :  { %262 = vmax.xlane.f32.xlu0 %v261_v10 }
 0x4e5   :  { %v263_v11 = vpop.xlane.xlu0 %262 }
 0x4e6   :  { %vm264_vm7 = vcmp.eq.f32.partialorder %v260_v9, %v263_v11  ;;  %v281_v12 = vadd.f32 %v263_v11, %v241_v59  ;;  %v284_v18 = vsel %vm283_vm8, %v241_v59, %v263_v11 }
 0x4e7   :  { %v265_v13 = vsel %vm264_vm7, %v238_v58, 8 }
 0x4e8   :  { %370 = vrcp.f32 %v281_v12  ;;  %v266_v14 = vsel %vm230_vm3, %v265_v13, 2147483647 }
 0x4e9   :  { %v268_v15 = vshra.s32 %v266_v14, 16  ;;  %v267_v20 = vand.u32 65535, %v266_v14 }
 0x4eb   :  { %v270_v16 = vcvt.s32.f32 %v268_v15  ;;  %v269_v22 = vcvt.s32.f32 %v267_v20 }
 0x4ed   :  { %271 = vmin.xlane.f32.xlu1 %v270_v16 }
 0x4f2   :  { %v371_v17 = vpop.eup %370 }
 0x4f3   :  { %v285_v19 = vmul.f32 %v371_v17, %v284_v18 }
 0x4f5   :  { %287 = vst.msk [vmem:[%s469_s5] sm:$0xf] %vm286_vm9, %v285_v19 }
 0x57a   :  { %v272_v21 = vpop.xlane.xlu1 %271 }
 0x57b   :  { %vm273_vm10 = vcmp.eq.f32.partialorder %v270_v16, %v272_v21  ;;  %v278_v24 = vcvt.f32.s32 %v272_v21 }
 0x57c   :  { %v274_v23 = vsel %vm273_vm10, %v269_v22, inf }
 0x57d   :  { %275 = vmin.xlane.f32.xlu0 %v274_v23  ;;  %v279_v26 = vshll.u32 %v278_v24, 16 }
 0x60a   :  { %v276_v25 = vpop.xlane.xlu0 %275 }
 0x60b   :  { %v277_v27 = vcvt.f32.s32 %v276_v25 }
 0x60d   :  { %v280_v28 = vadd.s32 %v279_v26, %v277_v27 }
 0x60f   :  { %v288_v29 = vsel %vm283_vm8, %v258_v8, %v280_v28 }
 0x610   :  { %289 = vst.msk [vmem:[%s470_s6] sm:$0xf] %vm286_vm9, %v288_v29 }

// kernel: tpu_custom_call.1
= control target key start
LH: loop header
LB: loop body
LE: loop exit
PB: predicated region body
PF: predicated region fallthrough
CT: control target
= control target key end

     0   :  { %v372_v0 = vmov 0.0   ;;  %vm373_vm0 = vmmov 0   ;;  %v374_v38 = vmov -1.0   ;;  %vm186_vm2 = vcmask 261120   ;;  %s464_s1 = inlined_call_operand.vmem [shape: bf16[128,32], index: 1, kind: input, shape index: {}]   ;;  %s465_s0 = inlined_call_operand.vmem [shape: bf16[4,128], index: 0, kind: input, shape index: {}]   ;;  %s466_s3 = inlined_call_operand.vmem [shape: bf16[32,8], index: 3, kind: input, shape index: {}]   ;;  %s467_s2 = inlined_call_operand.vmem [shape: f32[1,32], index: 2, kind: input, shape index: {}]   ;;  %s468_s4 = inlined_call_operand.vmem [shape: f32[1,8], index: 4, kind: input, shape index: {}]   ;;  %s469_s5 = inlined_call_operand.vmem [shape: f32[4,2], index: 5, kind: output, shape index: {0}]   ;;  %s470_s6 = inlined_call_operand.vmem [shape: s32[4,2], index: 6, kind: output, shape index: {1}]  }
   0x1   :  { %323 = vmatprep.subr.bf16.mxu0 %v372_v0  ;;  %v354_v1 = vld [vmem:[%s464_s1] sm:$0xff]   ;;  %339 = vmatprep.mubr.msk.bf16.mxu0 %vm373_vm0, %v372_v0  ;;  %v355_v2 = vld [vmem:[%s464_s1 + $0x8] sm:$0xff]   ;;  %v356_v3 = vld [vmem:[%s464_s1 + $0x10] sm:$0xff]   ;;  %vm230_vm3 = vcmask 60416   ;;  %v237_v57 = vlaneseq  ;;  %vm283_vm8 = vcmask 7168   ;;  %vm286_vm9 = vcmask 11264  }
   0x2   :  { %343 = vmatprep.subr.bf16.mxu1 %v372_v0  ;;  %347 = vmatprep.mubr.msk.bf16.mxu1 %vm373_vm0, %v372_v0  ;;  %v357_v4 = vld [vmem:[%s464_s1 + $0x18] sm:$0xff]   ;;  %v358_v5 = vld [vmem:[%s464_s1 + $0x20] sm:$0xff]   ;;  %v359_v6 = vld [vmem:[%s464_s1 + $0x28] sm:$0xff]  }
   0x3   :  { %324 = vmatpush3.bf16.msra.mxu0 %v354_v1  ;;  %v360_v7 = vld [vmem:[%s464_s1 + $0x30] sm:$0xff]   ;;  %v361_v8 = vld [vmem:[%s464_s1 + $0x38] sm:$0xff]   ;;  %v23_v9 = vld [vmem:[%s465_s0] sm:$0x3]  ;;  %v238_v58 = vand.u32 127, %v237_v57 }
   0x4   :  { %325 = vmatprep.subr.bf16.mxu0 %v372_v0  ;;  %v362_v10 = vld [vmem:[%s466_s3] sm:$0xff]   ;;  %v363_v11 = vld [vmem:[%s466_s3 + $0x8] sm:$0xff]  }
   0x5   :  { %344 = vmatpush3.bf16.msra.mxu1 %v362_v10  ;;  %v298_v12 = vld [vmem:[%s467_s2] ss:$0 sm:$0xff] }
   0x6   :  { %345 = vmatprep.subr.bf16.mxu1 %v372_v0  ;;  %v307_v45 = vld [vmem:[%s468_s4] ss:$0 sm:$0xff] }
   0x7   :  { %326 = vmatpush3.bf16.msra.mxu0 %v355_v2 }
   0x8   :  { %327 = vmatprep.subr.bf16.mxu0 %v372_v0 }
   0x9   :  { %346 = vmatpush3.bf16.msra.mxu1 %v363_v11 }
   0xb   :  { %328 = vmatpush3.bf16.msra.mxu0 %v356_v3 }
   0xc   :  { %329 = vmatprep.subr.bf16.mxu0 %v372_v0 }
   0xf   :  { %330 = vmatpush3.bf16.msra.mxu0 %v357_v4 }
  0x10   :  { %331 = vmatprep.subr.bf16.mxu0 %v372_v0 }
  0x13   :  { %332 = vmatpush3.bf16.msra.mxu0 %v358_v5 }
  0x14   :  { %333 = vmatprep.subr.bf16.mxu0 %v372_v0 }
  0x17   :  { %334 = vmatpush3.bf16.msra.mxu0 %v359_v6 }
  0x18   :  { %335 = vmatprep.subr.bf16.mxu0 %v372_v0 }
  0x1b   :  { %336 = vmatpush3.bf16.msra.mxu0 %v360_v7 }
  0x1c   :  { %337 = vmatprep.subr.bf16.mxu0 %v372_v0 }
  0x1f   :  { %338 = vmatpush3.bf16.msra.mxu0 %v361_v8 }
  0x22   :  { %340 = vmatmul.mubr.bf16.vlgmr.msra.gmra.mrb[0].mxu0 %v23_v9 }
  0xf5   :  { %v129_v13 = vpop.f32.mrb[0].mxu0 }
  0xf6   :  { %v130_v14 = vadd.f32 %v298_v12, %v129_v13  ;;  %v341_v15 = vpop.f32.mrb[1].mxu0 }
  0xf7   :  { %v132_v16 = vpop.f32.mrb[2].mxu0 }
  0xf8   :  { %v136_v17 = vmul.f32 0.70710677, %v130_v14  ;;  %v342_v18 = vpop.f32.mrb[3].mxu0  ;;  %v135_v41 = vmul.f32 0.5, %v130_v14 }
  0xfa   :  { %v139_v19 = vand.u32 2147483647, %v136_v17  ;;  %vm137_vm1 = vcmp.ge.f32.partialorder %v136_v17, 0.0 }
  0xfb   :  { %v138_v39 = vsel %vm137_vm1, 1.0, %v374_v38 }
  0xfc   :  { %v140_v20 = vmul.f32 0.3275911, %v139_v19  ;;  %v153_v22 = vsub.f32 0.0, %v139_v19 }
  0xfe   :  { %v141_v21 = vadd.f32 1.0, %v140_v20  ;;  %v154_v24 = vmul.f32 %v153_v22, %v139_v19 }
 0x100   :  { %364 = vrcp.f32 %v141_v21  ;;  %v155_v27 = vmul.f32 1.442695, %v154_v24 }
 0x102   :  { %366 = vpow2.f32 %v155_v27 }
 0x10a   :  { %v365_v23 = vpop.eup %364 }
 0x10b   :  { %v144_v25 = vmul.f32 1.0614054, %v365_v23 }
 0x10c   :  { %v367_v35 = vpop.eup %366 }
 0x10d   :  { %v145_v26 = vadd.f32 -1.4531521, %v144_v25 }
 0x10f   :  { %v146_v28 = vmul.f32 %v365_v23, %v145_v26 }
 0x111   :  { %v147_v29 = vadd.f32 1.4214138, %v146_v28 }
 0x113   :  { %v148_v30 = vmul.f32 %v365_v23, %v147_v29 }
 0x115   :  { %v149_v31 = vadd.f32 -0.28449672, %v148_v30 }
 0x117   :  { %v150_v32 = vmul.f32 %v365_v23, %v149_v31 }
 0x119   :  { %v151_v33 = vadd.f32 0.2548296, %v150_v32 }
 0x11b   :  { %v152_v34 = vmul.f32 %v365_v23, %v151_v33 }
 0x11d   :  { %v157_v36 = vmul.f32 %v367_v35, %v152_v34 }
 0x11f   :  { %v158_v37 = vsub.f32 1.0, %v157_v36 }
 0x121   :  { %v159_v40 = vmul.f32 %v158_v37, %v138_v39 }
 0x123   :  { %v160_v42 = vadd.f32 1.0, %v159_v40 }
 0x125   :  { %v161_v43 = vmul.f32 %v160_v42, %v135_v41 }
 0x127   :  { %v162_v44 = vpack.c.bf16 %v161_v43, %v161_v43 }
 0x129   :  { %348 = vmatmul.mubr.msk.bf16.vlgmr.msra.gmra.mrb[0].mxu1 %vm186_vm2, %v162_v44 }
 0x1fc   :  { %v224_v46 = vpop.f32.mrb[0].mxu1 }
 0x1fd   :  { %v225_v47 = vadd.f32 %v307_v45, %v224_v46  ;;  %v349_v48 = vpop.f32.mrb[1].mxu1 }
 0x1fe   :  { %v227_v49 = vpop.f32.mrb[2].mxu1 }
 0x1ff   :  { %v350_v50 = vpop.f32.mrb[3].mxu1  ;;  %v231_v51 = vsel %vm230_vm3, %v225_v47, -inf }
 0x200   :  { %232 = vmax.xlane.f32.xlu0 %v231_v51 }
 0x28d   :  { %v233_v52 = vpop.xlane.xlu0 %232 }
 0x28e   :  { %v234_v53 = vsub.f32 %v225_v47, %v233_v52 }
 0x290   :  { %v235_v54 = vmul.f32 1.442695, %v234_v53 }
 0x292   :  { %368 = vpow2.f32 %v235_v54 }
 0x29c   :  { %v369_v55 = vpop.eup %368 }
 0x29d   :  { %v239_v56 = vsel %vm230_vm3, %v369_v55, -inf }
 0x29e   :  { %240 = vmax.xlane.f32.xlu0 %v239_v56 }
 0x32b   :  { %v241_v59 = vpop.xlane.xlu0 %240 }
 0x32c   :  { %vm242_vm4 = vcmp.eq.f32.partialorder %v369_v55, %v241_v59 }
 0x32d   :  { %v243_v60 = vsel %vm242_vm4, %v238_v58, 8 }
 0x32e   :  { %v244_v61 = vsel %vm230_vm3, %v243_v60, 2147483647 }
 0x32f   :  { %v246_v62 = vshra.s32 %v244_v61, 16  ;;  %v245_v0 = vand.u32 65535, %v244_v61 }
 0x331   :  { %v248_v63 = vcvt.s32.f32 %v246_v62  ;;  %v247_v2 = vcvt.s32.f32 %v245_v0 }
 0x333   :  { %249 = vmin.xlane.f32.xlu1 %v248_v63 }
 0x3c0   :  { %v250_v1 = vpop.xlane.xlu1 %249 }
 0x3c1   :  { %vm251_vm5 = vcmp.eq.f32.partialorder %v248_v63, %v250_v1  ;;  %v256_v4 = vcvt.f32.s32 %v250_v1 }
 0x3c2   :  { %v252_v3 = vsel %vm251_vm5, %v247_v2, inf }
 0x3c3   :  { %253 = vmin.xlane.f32.xlu1 %v252_v3  ;;  %v257_v6 = vshll.u32 %v256_v4, 16 }
 0x450   :  { %v254_v5 = vpop.xlane.xlu1 %253 }
 0x451   :  { %v255_v7 = vcvt.f32.s32 %v254_v5 }
 0x453   :  { %v258_v8 = vadd.s32 %v257_v6, %v255_v7 }
 0x455   :  { %vm259_vm6 = vcmp.eq.s32.totalorder %v238_v58, %v258_v8 }
 0x456   :  { %v260_v9 = vsel %vm259_vm6, -inf, %v369_v55 }
 0x457   :  { %v261_v10 = vsel %vm230_vm3, %v260_v9, -inf }
 0x458   :  { %262 = vmax.xlane.f32.xlu0 %v261_v10 }
 0x4e5   :  { %v263_v11 = vpop.xlane.xlu0 %262 }
 0x4e6   :  { %vm264_vm7 = vcmp.eq.f32.partialorder %v260_v9, %v263_v11  ;;  %v281_v12 = vadd.f32 %v263_v11, %v241_v59  ;;  %v284_v18 = vsel %vm283_vm8, %v241_v59, %v263_v11 }
 0x4e7   :  { %v265_v13 = vsel %vm264_vm7, %v238_v58, 8 }
 0x4e8   :  { %370 = vrcp.f32 %v281_v12  ;;  %v266_v14 = vsel %vm230_vm3, %v265_v13, 2147483647 }
 0x4e9   :  { %v268_v15 = vshra.s32 %v266_v14, 16  ;;  %v267_v20 = vand.u32 65535, %v266_v14 }
 0x4eb   :  { %v270_v16 = vcvt.s32.f32 %v268_v15  ;;  %v269_v22 = vcvt.s32.f32 %v267_v20 }
 0x4ed   :  { %271 = vmin.xlane.f32.xlu1 %v270_v16 }
 0x4f2   :  { %v371_v17 = vpop.eup %370 }
 0x4f3   :  { %v285_v19 = vmul.f32 %v371_v17, %v284_v18 }
 0x4f5   :  { %287 = vst.msk [vmem:[%s469_s5] sm:$0xf] %vm286_vm9, %v285_v19 }
 0x57a   :  { %v272_v21 = vpop.xlane.xlu1 %271 }
 0x57b   :  { %vm273_vm10 = vcmp.eq.f32.partialorder %v270_v16, %v272_v21  ;;  %v278_v24 = vcvt.f32.s32 %v272_v21 }
 0x57c   :  { %v274_v23 = vsel %vm273_vm10, %v269_v22, inf }
 0x57d   :  { %275 = vmin.xlane.f32.xlu0 %v274_v23  ;;  %v279_v26 = vshll.u32 %v278_v24, 16 }
 0x60a   :  { %v276_v25 = vpop.xlane.xlu0 %275 }
 0x60b   :  { %v277_v27 = vcvt.f32.s32 %v276_v25 }
 0x60d   :  { %v280_v28 = vadd.s32 %v279_v26, %v277_v27 }
 0x60f   :  { %v288_v29 = vsel %vm283_vm8, %v258_v8, %v280_v28 }
 0x610   :  { %289 = vst.msk [vmem:[%s470_s6] sm:$0xf] %vm286_vm9, %v288_v29 }

</bundles_post_ra>
